<compile_context>
chip_gen: v7x
topology: tpu7x:2x2x1
jax: 0.10.0
libtpu: 0.0.40
codegen_flags: <defaults>
</compile_context>

<pallas_src>
import functools

import jax
import jax.numpy as jnp
from jax.experimental import pallas as pl
from jax.experimental.pallas import tpu as pltpu


def _round_up(x, m):
    return ((x + m - 1) // m) * m


def _cdiv(a, b):
    return (a + b - 1) // b


# --------------------------------------------------------------------------- #
# Kernel
# --------------------------------------------------------------------------- #
def encoder2_kernel(x_ref, w1_ref, b1_ref, w23_ref, b23_ref, out_ref):
    # In-kernel cast of x (f32 in HBM) to the weight dtype: avoids a wrapper-side
    # pad+cast pass over the input. Accumulation is f32 on the MXU either way.
    x = x_ref[...].astype(w1_ref.dtype)
    h = jnp.dot(x, w1_ref[...], preferred_element_type=jnp.float32)
    h = jnp.maximum(h + b1_ref[...], 0.0)            # bias + ReLU in f32 (VPU)
    # fused mu|log_var heads: (tb, 512) @ (512, Np), Np lane-dense (multiple of 128)
    y = jnp.dot(h.astype(w23_ref.dtype), w23_ref[...],
                preferred_element_type=jnp.float32)
    out_ref[...] = (y + b23_ref[...]).astype(out_ref.dtype)


# --------------------------------------------------------------------------- #
# One-time parameter packing (hoisted out of the per-call path)
# --------------------------------------------------------------------------- #
def pack_params(params, *, use_bf16=True):
    """Pad/cast weights once.  params hold (in, out)-layout weights:
       w1 (input_size,512), b1 (1,512), w2/w3 (512,latent), b2/b3 (1,latent)."""
    K, H = params["w1"].shape
    latent = params["w2"].shape[1]
    Kp = _round_up(K, 128)                 # zero-pad input features to lane multiple
    Np = _round_up(2 * latent, 128)        # mu|log_var packed contiguously
    wdt = jnp.bfloat16 if use_bf16 else jnp.float32

    w1 = jnp.zeros((Kp, H), jnp.float32).at[:K].set(
        params["w1"].astype(jnp.float32)).astype(wdt)
    b1 = params["b1"].reshape(1, H).astype(jnp.float32)

    w23 = jnp.zeros((H, Np), jnp.float32)
    w23 = w23.at[:, :latent].set(params["w2"].astype(jnp.float32))
    w23 = w23.at[:, latent:2 * latent].set(params["w3"].astype(jnp.float32))
    w23 = w23.astype(wdt)

    b23 = jnp.zeros((1, Np), jnp.float32)
    b23 = b23.at[:, :latent].set(params["b2"].reshape(1, latent).astype(jnp.float32))
    b23 = b23.at[:, latent:2 * latent].set(
        params["b3"].reshape(1, latent).astype(jnp.float32))

    return dict(w1=w1, b1=b1, w23=w23, b23=b23,
                K=K, Kp=Kp, latent=latent, Np=Np, use_bf16=use_bf16)


# --------------------------------------------------------------------------- #
# Forward
# --------------------------------------------------------------------------- #
def encoder2_forward(x, packed, *, batch_tile=None):
    """Pallas forward of Encoder2Layers.  Returns (mu, log_var), each (B, latent) f32."""
    B = x.shape[0]
    x2 = x.reshape(B, -1).astype(jnp.float32)        # torch.flatten(start_dim=1)
    K = x2.shape[1]
    if K != packed["K"]:
        raise ValueError(f"input feature size {K} != packed params {packed['K']}")
    Kp, latent, Np = packed["Kp"], packed["latent"], packed["Np"]
    w1, b1, w23, b23 = packed["w1"], packed["b1"], packed["w23"], packed["b23"]

    # x / out blocks stay f32, so 8-row sublane alignment suffices; use 16 in the
    # bf16 path to keep the packed bf16 intermediate vreg-friendly.
    row_align = 16 if packed["use_bf16"] else 8

    # ---- batch tiling heuristic (amortize per-step overhead; keep >=4 grid steps)
    if batch_tile is not None:
        tb = int(batch_tile)
        if tb <= 0 or tb % row_align:
            raise ValueError(f"batch_tile must be a positive multiple of {row_align}")
    elif B <= 1024:
        tb = _round_up(B, row_align)                 # single tile for small batches
    else:
        tb = min(2048, _round_up(_cdiv(B, 4), 256))  # big tiles, >=4 parallel steps
    Bp = _round_up(B, tb)

    # ---- feed x directly when already aligned; otherwise pad the ragged edges only
    if (Bp, Kp) == x2.shape:
        xin = x2
    else:
        xin = jnp.zeros((Bp, Kp), jnp.float32).at[:B, :K].set(x2)
    # NOTE: padded batch rows compute relu(b1) @ w23 + b23 (garbage); they are
    # sliced away below and must never be reduced over before slicing.

    grid = (Bp // tb,)
    full = lambda a: pl.BlockSpec(a.shape, lambda i: (0, 0))   # VMEM-resident weights

    flops = 2 * Bp * (Kp * 512 + 512 * Np)
    bytes_accessed = (xin.size * xin.dtype.itemsize
                      + w1.size * w1.dtype.itemsize
                      + w23.size * w23.dtype.itemsize
                      + (b1.size + b23.size) * 4
                      + Bp * Np * 4)

    out = pl.pallas_call(
        encoder2_kernel,
        out_shape=jax.ShapeDtypeStruct((Bp, Np), jnp.float32),
        grid_spec=pltpu.PrefetchScalarGridSpec(
            num_scalar_prefetch=0,
            grid=grid,
            in_specs=[
                pl.BlockSpec((tb, Kp), lambda i: (i, 0)),
                full(w1), full(b1),
                full(w23), full(b23),
            ],
            out_specs=pl.BlockSpec((tb, Np), lambda i: (i, 0)),
        ),
        compiler_params=pltpu.CompilerParams(
            dimension_semantics=("parallel",),
            vmem_limit_bytes=64 * 1024 * 1024,       # headroom for 2K-row tiles
        ),
        cost_estimate=pl.CostEstimate(
            flops=flops, transcendentals=0, bytes_accessed=bytes_accessed),
    )(xin, w1, b1, w23, b23)

    mu = out[:B, :latent]
    log_var = out[:B, latent:2 * latent]
    return mu, log_var


# --------------------------------------------------------------------------- #
# Reference + init
# --------------------------------------------------------------------------- #
def init_params(key, input_size, latent_dims, dtype=jnp.float32):
    """Deterministic init mimicking nn.Linear default (uniform +-1/sqrt(fan_in))."""
    dims = {1: (input_size, 512), 2: (512, latent_dims), 3: (512, latent_dims)}
    params = {}
    for idx, (fan_in, fan_out) in dims.items():
        key, kw, kb = jax.random.split(key, 3)
        bound = 1.0 / (fan_in ** 0.5)
        params[f"w{idx}"] = jax.random.uniform(          # stored transposed: (in, out)
            kw, (fan_in, fan_out), dtype, minval=-bound, maxval=bound)
        params[f"b{idx}"] = jax.random.uniform(
            kb, (1, fan_out), dtype, minval=-bound, maxval=bound)
    return params


def reference_forward(x, params):
    x2 = x.reshape(x.shape[0], -1)
    h = jnp.maximum(x2 @ params["w1"] + params["b1"], 0.0)
    mu = h @ params["w2"] + params["b2"]
    log_var = h @ params["w3"] + params["b3"]
    return mu, log_var


if __name__ == "__main__":
    input_spatial = 16          # x is (batch, 16, 16) -> flattened input_size = 256
    latent_dims = 32
    batch = 8

    key = jax.random.PRNGKey(0)
    key, kx = jax.random.split(key)
    x = jax.random.normal(kx, (batch, input_spatial, input_spatial), jnp.float32)
    params = init_params(key, input_spatial * input_spatial, latent_dims)

    ref_mu, ref_lv = reference_forward(x, params)

    # ---- f32 path: tight correctness check
    packed32 = pack_params(params, use_bf16=False)
    mu32, lv32 = jax.block_until_ready(encoder2_forward(x, packed32))
    assert mu32.shape == (batch, latent_dims) and lv32.shape == (batch, latent_dims)
    assert jnp.allclose(mu32, ref_mu, atol=1e-4, rtol=1e-4), "mu mismatch (f32)"
    assert jnp.allclose(lv32, ref_lv, atol=1e-4, rtol=1e-4), "log_var mismatch (f32)"

    # ---- bf16 fast path (default): looser tolerance due to bf16 quantization
    packed16 = pack_params(params, use_bf16=True)
    mu16, lv16 = jax.block_until_ready(encoder2_forward(x, packed16))
    assert jnp.allclose(mu16, ref_mu, atol=3e-2, rtol=3e-2), "mu mismatch (bf16)"
    assert jnp.allclose(lv16, ref_lv, atol=3e-2, rtol=3e-2), "log_var mismatch (bf16)"

    # ---- exercise the multi-step tiled path (ragged batch, explicit batch_tile)
    batch2 = 40
    key, kx2 = jax.random.split(key)
    x_big = jax.random.normal(kx2, (batch2, input_spatial, input_spatial), jnp.float32)
    ref_mu2, ref_lv2 = reference_forward(x_big, params)
    mu2, lv2 = jax.block_until_ready(
        encoder2_forward(x_big, packed16, batch_tile=16))
    assert mu2.shape == (batch2, latent_dims) and lv2.shape == (batch2, latent_dims)
    assert jnp.allclose(mu2, ref_mu2, atol=3e-2, rtol=3e-2), "mu mismatch (tiled)"
    assert jnp.allclose(lv2, ref_lv2, atol=3e-2, rtol=3e-2), "log_var mismatch (tiled)"

    print("KERNEL_OK")
</pallas_src>

<mosaic_0001>
module attributes {stable_mosaic.version = 11 : i64} {
  func.func @encoder2_kernel(%arg0: i32, %arg1: memref<8x256xf32, #tpu.memory_space<vmem>>, %arg2: memref<256x512xf32, #tpu.memory_space<vmem>>, %arg3: memref<1x512xf32, #tpu.memory_space<vmem>>, %arg4: memref<512x128xf32, #tpu.memory_space<vmem>>, %arg5: memref<1x128xf32, #tpu.memory_space<vmem>>, %arg6: memref<8x128xf32, #tpu.memory_space<vmem>>) attributes {dimension_semantics = [#tpu.dimension_semantics<parallel>], iteration_bounds = array<i64: 1>, scalar_prefetch = 0 : i64, scratch_operands = 0 : i64, tpu.core_type = #tpu.core_type<tc>, window_params = [{transform_indices = @transform_0, window_bounds = array<i64: 8, 256>}, {pipeline_mode = #tpu.pipeline_mode<synchronous>, transform_indices = @transform_1, window_bounds = array<i64: 256, 512>}, {pipeline_mode = #tpu.pipeline_mode<synchronous>, transform_indices = @transform_2, window_bounds = array<i64: 1, 512>}, {pipeline_mode = #tpu.pipeline_mode<synchronous>, transform_indices = @transform_3, window_bounds = array<i64: 512, 128>}, {pipeline_mode = #tpu.pipeline_mode<synchronous>, transform_indices = @transform_4, window_bounds = array<i64: 1, 128>}, {transform_indices = @transform_5, window_bounds = array<i64: 8, 128>}]} {
    %c0 = arith.constant 0 : index
    %c0_0 = arith.constant 0 : index
    %0 = vector.load %arg1[%c0, %c0_0] : memref<8x256xf32, #tpu.memory_space<vmem>>, vector<8x256xf32>
    %c0_1 = arith.constant 0 : index
    %c0_2 = arith.constant 0 : index
    %1 = vector.load %arg2[%c0_1, %c0_2] : memref<256x512xf32, #tpu.memory_space<vmem>>, vector<256x512xf32>
    %cst = arith.constant dense<0.000000e+00> : vector<8x512xf32>
    %2 = tpu.matmul %0, %1, %cst {dimension_numbers = #tpu.dot_dimension_numbers<[1], [0], [0], [1], [0, 0, 1, 1], [], []>} : vector<8x256xf32>, vector<256x512xf32>, vector<8x512xf32> -> vector<8x512xf32>
    %c0_3 = arith.constant 0 : index
    %c0_4 = arith.constant 0 : index
    %3 = vector.load %arg3[%c0_3, %c0_4] : memref<1x512xf32, #tpu.memory_space<vmem>>, vector<1x512xf32>
    %4 = vector.broadcast %3 : vector<1x512xf32> to vector<8x512xf32>
    %5 = arith.addf %2, %4 : vector<8x512xf32>
    %cst_5 = arith.constant 0.000000e+00 : f32
    %6 = vector.broadcast %cst_5 : f32 to vector<8x512xf32>
    %7 = arith.maximumf %5, %6 : vector<8x512xf32>
    %c0_6 = arith.constant 0 : index
    %c0_7 = arith.constant 0 : index
    %8 = vector.load %arg4[%c0_6, %c0_7] : memref<512x128xf32, #tpu.memory_space<vmem>>, vector<512x128xf32>
    %cst_8 = arith.constant dense<0.000000e+00> : vector<8x128xf32>
    %9 = tpu.matmul %7, %8, %cst_8 {dimension_numbers = #tpu.dot_dimension_numbers<[1], [0], [0], [1], [0, 0, 1, 1], [], []>} : vector<8x512xf32>, vector<512x128xf32>, vector<8x128xf32> -> vector<8x128xf32>
    %c0_9 = arith.constant 0 : index
    %c0_10 = arith.constant 0 : index
    %10 = vector.load %arg5[%c0_9, %c0_10] : memref<1x128xf32, #tpu.memory_space<vmem>>, vector<1x128xf32>
    %11 = vector.broadcast %10 : vector<1x128xf32> to vector<8x128xf32>
    %12 = arith.addf %9, %11 : vector<8x128xf32>
    %c0_11 = arith.constant 0 : index
    %c0_12 = arith.constant 0 : index
    %13 = vector.load %arg6[%c0_11, %c0_12] : memref<8x128xf32, #tpu.memory_space<vmem>>, vector<8x128xf32>
    tpu.vector_store %arg6[%c0_11, %c0_12], %12 {strides = array<i32>} : memref<8x128xf32, #tpu.memory_space<vmem>>, vector<8x128xf32>,
    return
  }
  func.func @transform_0(%arg0: i32) -> (i32, i32) {
    %c0_i32 = arith.constant 0 : i32
    %c0_i32_0 = arith.constant 0 : i32
    return %arg0, %c0_i32 : i32, i32
  }
  func.func @transform_1(%arg0: i32) -> (i32, i32) {
    %c0_i32 = arith.constant 0 : i32
    %c0_i32_0 = arith.constant 0 : i32
    %c0_i32_1 = arith.constant 0 : i32
    return %c0_i32, %c0_i32_0 : i32, i32
  }
  func.func @transform_2(%arg0: i32) -> (i32, i32) {
    %c0_i32 = arith.constant 0 : i32
    %c0_i32_0 = arith.constant 0 : i32
    %c0_i32_1 = arith.constant 0 : i32
    return %c0_i32, %c0_i32_0 : i32, i32
  }
  func.func @transform_3(%arg0: i32) -> (i32, i32) {
    %c0_i32 = arith.constant 0 : i32
    %c0_i32_0 = arith.constant 0 : i32
    %c0_i32_1 = arith.constant 0 : i32
    return %c0_i32, %c0_i32_0 : i32, i32
  }
  func.func @transform_4(%arg0: i32) -> (i32, i32) {
    %c0_i32 = arith.constant 0 : i32
    %c0_i32_0 = arith.constant 0 : i32
    %c0_i32_1 = arith.constant 0 : i32
    return %c0_i32, %c0_i32_0 : i32, i32
  }
  func.func @transform_5(%arg0: i32) -> (i32, i32) {
    %c0_i32 = arith.constant 0 : i32
    %c0_i32_0 = arith.constant 0 : i32
    return %arg0, %c0_i32 : i32, i32
  }
}

</mosaic_0001>

<bundles_post_ra>
// kernel: tpu_custom_call.1
= control target key start
LH: loop header
LB: loop body
LE: loop exit
PB: predicated region body
PF: predicated region fallthrough
CT: control target
= control target key end

     0   :  { %10 = vsyncpa [#allocation3], 0  ;;  %s1135_s0 = inlined_call_operand.hbm [shape: f32[8,256], index: 0, kind: input, shape index: {}]   ;;  %s1136_s1 = inlined_call_operand.hbm [shape: f32[256,512], index: 1, kind: input, shape index: {}]   ;;  %s1137_s2 = inlined_call_operand.hbm [shape: f32[1,512], index: 2, kind: input, shape index: {}]   ;;  %s1138_s3 = inlined_call_operand.hbm [shape: f32[512,128], index: 3, kind: input, shape index: {}]   ;;  %s1139_s4 = inlined_call_operand.hbm [shape: f32[1,128], index: 4, kind: input, shape index: {}]   ;;  %s1140_s5 = inlined_call_operand.hbm [shape: f32[8,128], index: 5, kind: output, shape index: {}]  }
   0x1   :  { %11 = vsyncpa [#allocation6], 0 }
   0x2   :  { %12 = vsyncpa [#allocation9], 0 }
   0x3   :  { %13 = vsyncpa [#allocation4], 0  ;;  %s1023_s18 = smov [#allocation5]   ;;  %s883_s22 = scalar_lea.hbm %s1136_s1, 16384 }
   0x4   :  { %s29_s19 = sshll.u32 %s1023_s18, 4  ;;  %p884_p0 = scmp.ne.s32.totalorder %s1136_s1, %s883_s22  ;;  %s30_s19 = int_to_ptr.vmem [resolvable:$true] %s29_s19 }
   0x5   :  { %p887_p1 = scmp.lt.u32.totalorder %s883_s22, %s1136_s1 }
   0x7   :  { %p889_p2 = pnand %p887_p1, %p884_p0 }
   0x9   :  { %892 = shalt.err (!%p889_p2)
}
   0xa   :  { %s893_s27 = scalar_lea.vmem %s30_s19, 16384  ;;  %p898_p4 = scmp.lt.s32.totalorder %s30_s19, %s30_s19 }
   0xb   :  { %p894_p3 = scmp.ne.s32.totalorder %s30_s19, %s893_s27  ;;  %p899_p5 = scmp.lt.s32.totalorder %s893_s27, %s893_s27 }
   0xd   :  { %p900_p6 = por %p899_p5, %p898_p4 }
   0xf   :  { %p901_p7 = pnand %p900_p6, %p894_p3 }
  0x11   :  { %904 = shalt.err (!%p901_p7)
}
  0x12   :  { %s1024_s28 = smov 512   ;;  %s1025_s29 = smov 32  }
  0x13   :  { %35 = dma.hbm_to_vmem [thread:$0]  %s1136_s1, 16384, %s30_s19, [#allocation6], %s1024_s28, %s1024_s28, %s1025_s29  }
  0x14   :  { %s1026_s7 = smov [#allocation8]   ;;  %s905_s11 = scalar_lea.hbm %s1138_s3, 8192 }
  0x15   :  { %s51_s8 = sshll.u32 %s1026_s7, 4  ;;  %p906_p8 = scmp.ne.s32.totalorder %s1138_s3, %s905_s11  ;;  %s52_s8 = int_to_ptr.vmem [resolvable:$true] %s51_s8 }
  0x16   :  { %p909_p9 = scmp.lt.u32.totalorder %s905_s11, %s1138_s3 }
  0x18   :  { %p911_p10 = pnand %p909_p9, %p906_p8 }
  0x1a   :  { %914 = shalt.err (!%p911_p10)
}
  0x1b   :  { %s915_s16 = scalar_lea.vmem %s52_s8, 8192  ;;  %p920_p12 = scmp.lt.s32.totalorder %s52_s8, %s52_s8 }
  0x1c   :  { %p916_p11 = scmp.ne.s32.totalorder %s52_s8, %s915_s16  ;;  %p921_p13 = scmp.lt.s32.totalorder %s915_s16, %s915_s16 }
  0x1e   :  { %p922_p0 = por %p921_p13, %p920_p12 }
  0x20   :  { %p923_p1 = pnand %p922_p0, %p916_p11 }
  0x22   :  { %926 = shalt.err (!%p923_p1)
}
  0x23   :  { %s1027_s1 = smov 128   ;;  %s1028_s17 = smov 8  }
  0x24   :  { %57 = dma.hbm_to_vmem [thread:$0]  %s1138_s3, 8192, %s52_s8, [#allocation9], %s1027_s1, %s1027_s1, %s1028_s17  }
  0x25   :  { %s1029_s20 = smov [#allocation2]   ;;  %s1030_s22 = smov [#allocation7]  }
  0x26   :  { %s20_s21 = sshll.u32 %s1029_s20, 4  ;;  %s42_s23 = sshll.u32 %s1030_s22, 4  ;;  %s21_s21 = int_to_ptr.vmem [resolvable:$true] %s20_s21  ;;  %s43_s23 = int_to_ptr.vmem [resolvable:$true] %s42_s23 }
  0x27   :  { %s927_s26 = scalar_lea.hbm %s1135_s0, 256 }
  0x28   :  { %p928_p2 = scmp.ne.s32.totalorder %s1135_s0, %s927_s26  ;;  %p931_p3 = scmp.lt.u32.totalorder %s927_s26, %s1135_s0 }
  0x2a   :  { %p933_p4 = pnand %p931_p3, %p928_p2 }
  0x2c   :  { %936 = shalt.err (!%p933_p4)
}
  0x2d   :  { %s937_s3 = scalar_lea.vmem %s21_s21, 256  ;;  %p942_p6 = scmp.lt.s32.totalorder %s21_s21, %s21_s21 }
  0x2e   :  { %p938_p5 = scmp.ne.s32.totalorder %s21_s21, %s937_s3  ;;  %p943_p7 = scmp.lt.s32.totalorder %s937_s3, %s937_s3 }
  0x30   :  { %p944_p8 = por %p943_p7, %p942_p6 }
  0x32   :  { %p945_p9 = pnand %p944_p8, %p938_p5 }
  0x34   :  { %948 = shalt.err (!%p945_p9)
}
  0x35   :  { %23 = dma.hbm_to_vmem [thread:$0]  %s1135_s0, 256, %s21_s21, [#allocation3]  }
  0x36   :  { %s949_s10 = scalar_lea.hbm %s1137_s2, 64 }
  0x37   :  { %p950_p10 = scmp.ne.s32.totalorder %s1137_s2, %s949_s10  ;;  %p953_p11 = scmp.lt.u32.totalorder %s949_s10, %s1137_s2 }
  0x39   :  { %p955_p12 = pnand %p953_p11, %p950_p10 }
  0x3b   :  { %958 = shalt.err (!%p955_p12)
}
  0x3c   :  { %s959_s15 = scalar_lea.vmem %s43_s23, 64  ;;  %p964_p0 = scmp.lt.s32.totalorder %s43_s23, %s43_s23 }
  0x3d   :  { %p960_p13 = scmp.ne.s32.totalorder %s43_s23, %s959_s15  ;;  %p965_p1 = scmp.lt.s32.totalorder %s959_s15, %s959_s15 }
  0x3f   :  { %p966_p2 = por %p965_p1, %p964_p0 }
  0x41   :  { %p967_p3 = pnand %p966_p2, %p960_p13 }
  0x43   :  { %970 = shalt.err (!%p967_p3)
}
  0x44   :  { %45 = dma.hbm_to_vmem [thread:$0]  %s1137_s2, 64, %s43_s23, [#allocation6]  }
  0x45   :  { %s1031_s1 = smov [#allocation10]   ;;  %s971_s20 = scalar_lea.hbm %s1139_s4, 16 }
  0x46   :  { %s64_s17 = sshll.u32 %s1031_s1, 4  ;;  %p972_p4 = scmp.ne.s32.totalorder %s1139_s4, %s971_s20  ;;  %s65_s17 = int_to_ptr.vmem [resolvable:$true] %s64_s17 }
  0x47   :  { %p975_p5 = scmp.lt.u32.totalorder %s971_s20, %s1139_s4 }
  0x49   :  { %p977_p6 = pnand %p975_p5, %p972_p4 }
  0x4b   :  { %980 = shalt.err (!%p977_p6)
}
  0x4c   :  { %s981_s26 = scalar_lea.vmem %s65_s17, 16  ;;  %s985_s2 = scalar_lea.vmem %s65_s17, 32 }
  0x4d   :  { %p982_p7 = scmp.ne.s32.totalorder %s65_s17, %s981_s26  ;;  %p986_p8 = scmp.lt.s32.totalorder %s65_s17, %s65_s17 }
  0x4e   :  { %p987_p9 = scmp.lt.s32.totalorder %s985_s2, %s981_s26 }
  0x50   :  { %p988_p10 = por %p987_p9, %p986_p8 }
  0x52   :  { %p989_p11 = pnand %p988_p10, %p982_p7 }
  0x54   :  { %992 = shalt.err (!%p989_p11)
}
  0x55   :  { %67 = dma.hbm_to_vmem [thread:$0]  %s1139_s4, 16, %s65_s17, [#allocation9]  }
  0x56   :  { %1015 = dma.done.wait [#allocation3], 256  }
  0x57   :  { %1016 = vsyncadd [#allocation3], 4294967040 }
  0x58   :  { %1017 = dma.done.wait [#allocation6], 16448  }
  0x59   :  { %1018 = vsyncadd [#allocation6], 4294950848 }
  0x5a   :  { %1019 = dma.done.wait [#allocation9], 8208  }
  0x5b   :  { %1020 = vsyncadd [#allocation9], 4294959088  ;;  %v86_v0 = vld [vmem:[#allocation5 + $0x8] sm:$0xff]  ;;  %v88_v2 = vld [vmem:[#allocation5 + $0x18] sm:$0xff]  ;;  %s1032_s4 = smov [#allocation11]  }
  0x5c   :  { %v90_v1 = vld [vmem:[#allocation5 + $0x28] sm:$0xff]  ;;  %v92_v4 = vld [vmem:[#allocation5 + $0x38] sm:$0xff]  ;;  %v85_v5 = vld [vmem:[#allocation5] sm:$0xff]  ;;  %s599_s28 = sshll.u32 %s1032_s4, 4  ;;  %s600_s28 = int_to_ptr.vmem [resolvable:$true] %s599_s28 }
  0x5d   :  { %v681_v3 = vpack.c.bf16 %v90_v1, %v86_v0  ;;  %v89_v6 = vld [vmem:[#allocation5 + $0x20] sm:$0xff]  ;;  %v745_v7 = vpack.c.bf16 %v92_v4, %v88_v2  ;;  %v87_v9 = vld [vmem:[#allocation5 + $0x10] sm:$0xff]  ;;  %v94_v11 = vld [vmem:[#allocation5 + $0x48] sm:$0xff]  ;;  %s993_s29 = scalar_lea.vmem %s600_s28, 128  ;;  %p998_p13 = scmp.lt.s32.totalorder %s600_s28, %s600_s28 }
  0x5e   :  { %v683_v8 = vpack.c.bf16 %v89_v6, %v85_v5  ;;  %v91_v10 = vld [vmem:[#allocation5 + $0x30] sm:$0xff]  ;;  %v98_v13 = vld [vmem:[#allocation5 + $0x68] sm:$0xff]  ;;  %v96_v14 = vld [vmem:[#allocation5 + $0x58] sm:$0xff]  ;;  %p994_p12 = scmp.ne.s32.totalorder %s600_s28, %s993_s29  ;;  %p999_p0 = scmp.lt.s32.totalorder %s993_s29, %s993_s29 }
  0x5f   :  { %682 = vmatprep.subr.bf16.mxu0 %v681_v3  ;;  %v747_v12 = vpack.c.bf16 %v91_v10, %v87_v9  ;;  %v100_v15 = vld [vmem:[#allocation5 + $0x78] sm:$0xff]  ;;  %746 = vmatprep.subr.bf16.mxu1 %v745_v7  ;;  %v685_v16 = vpack.c.bf16 %v98_v13, %v94_v11  ;;  %v93_v18 = vld [vmem:[#allocation5 + $0x40] sm:$0xff]  ;;  %v95_v20 = vld [vmem:[#allocation5 + $0x50] sm:$0xff] }
  0x60   :  { %684 = vmatpush1.bf16.msra.mxu0 %v683_v8  ;;  %v749_v17 = vpack.c.bf16 %v100_v15, %v96_v14  ;;  %v97_v19 = vld [vmem:[#allocation5 + $0x60] sm:$0xff]  ;;  %v99_v22 = vld [vmem:[#allocation5 + $0x70] sm:$0xff]  ;;  %v102_v23 = vld [vmem:[#allocation5 + $0x88] sm:$0xff]  ;;  %p1000_p1 = por %p999_p0, %p998_p13 }
  0x61   :  { %748 = vmatpush1.bf16.msra.mxu1 %v747_v12  ;;  %v687_v21 = vpack.c.bf16 %v97_v19, %v93_v18  ;;  %v106_v24 = vld [vmem:[#allocation5 + $0xa8] sm:$0xff]  ;;  %686 = vmatprep.subr.bf16.mxu0 %v685_v16  ;;  %v751_v25 = vpack.c.bf16 %v99_v22, %v95_v20  ;;  %v104_v27 = vld [vmem:[#allocation5 + $0x98] sm:$0xff]  ;;  %v101_v29 = vld [vmem:[#allocation5 + $0x80] sm:$0xff] }
  0x62   :  { %750 = vmatprep.subr.bf16.mxu1 %v749_v17  ;;  %v689_v26 = vpack.c.bf16 %v106_v24, %v102_v23  ;;  %v108_v28 = vld [vmem:[#allocation5 + $0xb8] sm:$0xff]  ;;  %v105_v31 = vld [vmem:[#allocation5 + $0xa0] sm:$0xff]  ;;  %v103_v32 = vld [vmem:[#allocation5 + $0x90] sm:$0xff]  ;;  %p1001_p2 = pnand %p1000_p1, %p994_p12 }
  0x63   :  { %v753_v30 = vpack.c.bf16 %v108_v28, %v104_v27  ;;  %v107_v33 = vld [vmem:[#allocation5 + $0xb0] sm:$0xff]  ;;  %v691_v34 = vpack.c.bf16 %v105_v31, %v101_v29  ;;  %v110_v35 = vld [vmem:[#allocation5 + $0xc8] sm:$0xff]  ;;  %v112_v37 = vld [vmem:[#allocation5 + $0xd8] sm:$0xff] }
  0x64   :  { %688 = vmatpush1.bf16.msra.mxu0 %v687_v21  ;;  %v114_v36 = vld [vmem:[#allocation5 + $0xe8] sm:$0xff]  ;;  %v755_v38 = vpack.c.bf16 %v107_v33, %v103_v32  ;;  %v116_v40 = vld [vmem:[#allocation5 + $0xf8] sm:$0xff]  ;;  %v109_v41 = vld [vmem:[#allocation5 + $0xc0] sm:$0xff] }
  0x65   :  { %752 = vmatpush1.bf16.msra.mxu1 %v751_v25  ;;  %690 = vmatprep.subr.bf16.mxu0 %v689_v26  ;;  %v693_v39 = vpack.c.bf16 %v114_v36, %v110_v35  ;;  %v113_v42 = vld [vmem:[#allocation5 + $0xe0] sm:$0xff]  ;;  %v757_v43 = vpack.c.bf16 %v116_v40, %v112_v37  ;;  %v111_v44 = vld [vmem:[#allocation5 + $0xd0] sm:$0xff]  ;;  %v118_v46 = vld [vmem:[#allocation5 + $0x108] sm:$0xff] }
  0x66   :  { %754 = vmatprep.subr.bf16.mxu1 %v753_v30  ;;  %v115_v45 = vld [vmem:[#allocation5 + $0xf0] sm:$0xff]  ;;  %v122_v47 = vld [vmem:[#allocation5 + $0x128] sm:$0xff]  ;;  %v120_v48 = vld [vmem:[#allocation5 + $0x118] sm:$0xff]  ;;  %v695_v50 = vpack.c.bf16 %v113_v42, %v109_v41 }
  0x67   :  { %v124_v49 = vld [vmem:[#allocation5 + $0x138] sm:$0xff]  ;;  %v759_v51 = vpack.c.bf16 %v115_v45, %v111_v44  ;;  %v697_v52 = vpack.c.bf16 %v122_v47, %v118_v46  ;;  %v117_v53 = vld [vmem:[#allocation5 + $0x100] sm:$0xff]  ;;  %v119_v55 = vld [vmem:[#allocation5 + $0x110] sm:$0xff] }
  0x68   :  { %692 = vmatpush1.bf16.msra.mxu0 %v691_v34  ;;  %v121_v54 = vld [vmem:[#allocation5 + $0x120] sm:$0xff]  ;;  %v761_v56 = vpack.c.bf16 %v124_v49, %v120_v48  ;;  %v123_v57 = vld [vmem:[#allocation5 + $0x130] sm:$0xff]  ;;  %v126_v58 = vld [vmem:[#allocation5 + $0x148] sm:$0xff] }
  0x69   :  { %756 = vmatpush1.bf16.msra.mxu1 %v755_v38  ;;  %694 = vmatprep.subr.bf16.mxu0 %v693_v39  ;;  %v130_v59 = vld [vmem:[#allocation5 + $0x168] sm:$0xff]  ;;  %v128_v60 = vld [vmem:[#allocation5 + $0x158] sm:$0xff]  ;;  %v699_v62 = vpack.c.bf16 %v121_v54, %v117_v53  ;;  %v763_v63 = vpack.c.bf16 %v123_v57, %v119_v55  ;;  %v125_v1 = vld [vmem:[#allocation5 + $0x140] sm:$0xff] }
  0x6a   :  { %758 = vmatprep.subr.bf16.mxu1 %v757_v43  ;;  %v132_v61 = vld [vmem:[#allocation5 + $0x178] sm:$0xff]  ;;  %v701_v0 = vpack.c.bf16 %v130_v59, %v126_v58  ;;  %v129_v2 = vld [vmem:[#allocation5 + $0x160] sm:$0xff]  ;;  %v127_v3 = vld [vmem:[#allocation5 + $0x150] sm:$0xff] }
  0x6b   :  { %v765_v4 = vpack.c.bf16 %v132_v61, %v128_v60  ;;  %v131_v5 = vld [vmem:[#allocation5 + $0x170] sm:$0xff]  ;;  %v134_v6 = vld [vmem:[#allocation5 + $0x188] sm:$0xff]  ;;  %v136_v8 = vld [vmem:[#allocation5 + $0x198] sm:$0xff]  ;;  %v703_v10 = vpack.c.bf16 %v129_v2, %v125_v1 }
  0x6c   :  { %696 = vmatpush1.bf16.msra.mxu0 %v695_v50  ;;  %v138_v7 = vld [vmem:[#allocation5 + $0x1a8] sm:$0xff]  ;;  %v140_v9 = vld [vmem:[#allocation5 + $0x1b8] sm:$0xff]  ;;  %v767_v11 = vpack.c.bf16 %v131_v5, %v127_v3  ;;  %v133_v13 = vld [vmem:[#allocation5 + $0x180] sm:$0xff] }
  0x6d   :  { %760 = vmatpush1.bf16.msra.mxu1 %v759_v51  ;;  %698 = vmatprep.subr.bf16.mxu0 %v697_v52  ;;  %v705_v12 = vpack.c.bf16 %v138_v7, %v134_v6  ;;  %v137_v14 = vld [vmem:[#allocation5 + $0x1a0] sm:$0xff]  ;;  %v135_v15 = vld [vmem:[#allocation5 + $0x190] sm:$0xff]  ;;  %v769_v16 = vpack.c.bf16 %v140_v9, %v136_v8  ;;  %v142_v18 = vld [vmem:[#allocation5 + $0x1c8] sm:$0xff] }
  0x6e   :  { %762 = vmatprep.subr.bf16.mxu1 %v761_v56  ;;  %v139_v17 = vld [vmem:[#allocation5 + $0x1b0] sm:$0xff]  ;;  %v146_v19 = vld [vmem:[#allocation5 + $0x1e8] sm:$0xff]  ;;  %v144_v20 = vld [vmem:[#allocation5 + $0x1d8] sm:$0xff]  ;;  %v707_v22 = vpack.c.bf16 %v137_v14, %v133_v13 }
  0x6f   :  { %v148_v21 = vld [vmem:[#allocation5 + $0x1f8] sm:$0xff]  ;;  %v771_v23 = vpack.c.bf16 %v139_v17, %v135_v15  ;;  %v709_v24 = vpack.c.bf16 %v146_v19, %v142_v18  ;;  %v141_v25 = vld [vmem:[#allocation5 + $0x1c0] sm:$0xff]  ;;  %v143_v27 = vld [vmem:[#allocation5 + $0x1d0] sm:$0xff] }
  0x70   :  { %700 = vmatpush1.bf16.msra.mxu0 %v699_v62  ;;  %v145_v26 = vld [vmem:[#allocation5 + $0x1e0] sm:$0xff]  ;;  %v773_v28 = vpack.c.bf16 %v148_v21, %v144_v20  ;;  %v147_v29 = vld [vmem:[#allocation5 + $0x1f0] sm:$0xff]  ;;  %v150_v30 = vld [vmem:[#allocation5 + $0x208] sm:$0xff] }
  0x71   :  { %764 = vmatpush1.bf16.msra.mxu1 %v763_v63  ;;  %702 = vmatprep.subr.bf16.mxu0 %v701_v0  ;;  %v154_v31 = vld [vmem:[#allocation5 + $0x228] sm:$0xff]  ;;  %v152_v32 = vld [vmem:[#allocation5 + $0x218] sm:$0xff]  ;;  %v711_v34 = vpack.c.bf16 %v145_v26, %v141_v25  ;;  %v775_v35 = vpack.c.bf16 %v147_v29, %v143_v27  ;;  %v149_v37 = vld [vmem:[#allocation5 + $0x200] sm:$0xff] }
  0x72   :  { %766 = vmatprep.subr.bf16.mxu1 %v765_v4  ;;  %v156_v33 = vld [vmem:[#allocation5 + $0x238] sm:$0xff]  ;;  %v713_v36 = vpack.c.bf16 %v154_v31, %v150_v30  ;;  %v153_v38 = vld [vmem:[#allocation5 + $0x220] sm:$0xff]  ;;  %v151_v39 = vld [vmem:[#allocation5 + $0x210] sm:$0xff] }
  0x73   :  { %v777_v40 = vpack.c.bf16 %v156_v33, %v152_v32  ;;  %v155_v41 = vld [vmem:[#allocation5 + $0x230] sm:$0xff]  ;;  %v158_v42 = vld [vmem:[#allocation5 + $0x248] sm:$0xff]  ;;  %v160_v44 = vld [vmem:[#allocation5 + $0x258] sm:$0xff]  ;;  %v715_v46 = vpack.c.bf16 %v153_v38, %v149_v37 }
  0x74   :  { %704 = vmatpush1.bf16.msra.mxu0 %v703_v10  ;;  %v162_v43 = vld [vmem:[#allocation5 + $0x268] sm:$0xff]  ;;  %v164_v45 = vld [vmem:[#allocation5 + $0x278] sm:$0xff]  ;;  %v779_v47 = vpack.c.bf16 %v155_v41, %v151_v39  ;;  %v157_v49 = vld [vmem:[#allocation5 + $0x240] sm:$0xff] }
  0x75   :  { %768 = vmatpush1.bf16.msra.mxu1 %v767_v11  ;;  %706 = vmatprep.subr.bf16.mxu0 %v705_v12  ;;  %v717_v48 = vpack.c.bf16 %v162_v43, %v158_v42  ;;  %v161_v50 = vld [vmem:[#allocation5 + $0x260] sm:$0xff]  ;;  %v159_v51 = vld [vmem:[#allocation5 + $0x250] sm:$0xff]  ;;  %v781_v52 = vpack.c.bf16 %v164_v45, %v160_v44  ;;  %v166_v54 = vld [vmem:[#allocation5 + $0x288] sm:$0xff] }
  0x76   :  { %770 = vmatprep.subr.bf16.mxu1 %v769_v16  ;;  %v163_v53 = vld [vmem:[#allocation5 + $0x270] sm:$0xff]  ;;  %v170_v55 = vld [vmem:[#allocation5 + $0x2a8] sm:$0xff]  ;;  %v168_v56 = vld [vmem:[#allocation5 + $0x298] sm:$0xff]  ;;  %v719_v58 = vpack.c.bf16 %v161_v50, %v157_v49 }
  0x77   :  { %v172_v57 = vld [vmem:[#allocation5 + $0x2b8] sm:$0xff]  ;;  %v783_v59 = vpack.c.bf16 %v163_v53, %v159_v51  ;;  %v721_v60 = vpack.c.bf16 %v170_v55, %v166_v54  ;;  %v165_v61 = vld [vmem:[#allocation5 + $0x280] sm:$0xff]  ;;  %v167_v63 = vld [vmem:[#allocation5 + $0x290] sm:$0xff] }
  0x78   :  { %708 = vmatpush1.bf16.msra.mxu0 %v707_v22  ;;  %v169_v62 = vld [vmem:[#allocation5 + $0x2a0] sm:$0xff]  ;;  %v785_v0 = vpack.c.bf16 %v172_v57, %v168_v56  ;;  %v171_v1 = vld [vmem:[#allocation5 + $0x2b0] sm:$0xff]  ;;  %v174_v2 = vld [vmem:[#allocation5 + $0x2c8] sm:$0xff] }
  0x79   :  { %772 = vmatpush1.bf16.msra.mxu1 %v771_v23  ;;  %710 = vmatprep.subr.bf16.mxu0 %v709_v24  ;;  %v178_v3 = vld [vmem:[#allocation5 + $0x2e8] sm:$0xff]  ;;  %v176_v4 = vld [vmem:[#allocation5 + $0x2d8] sm:$0xff]  ;;  %v723_v6 = vpack.c.bf16 %v169_v62, %v165_v61  ;;  %v173_v7 = vld [vmem:[#allocation5 + $0x2c0] sm:$0xff]  ;;  %v787_v8 = vpack.c.bf16 %v171_v1, %v167_v63 }
  0x7a   :  { %774 = vmatprep.subr.bf16.mxu1 %v773_v28  ;;  %v180_v5 = vld [vmem:[#allocation5 + $0x2f8] sm:$0xff]  ;;  %v725_v9 = vpack.c.bf16 %v178_v3, %v174_v2  ;;  %v177_v10 = vld [vmem:[#allocation5 + $0x2e0] sm:$0xff]  ;;  %v175_v11 = vld [vmem:[#allocation5 + $0x2d0] sm:$0xff] }
  0x7b   :  { %v179_v12 = vld [vmem:[#allocation5 + $0x2f0] sm:$0xff]  ;;  %v789_v13 = vpack.c.bf16 %v180_v5, %v176_v4  ;;  %v182_v14 = vld [vmem:[#allocation5 + $0x308] sm:$0xff]  ;;  %v84_v16 = vld [vmem:[#allocation2 + $0x8] sm:$0xff]  ;;  %v727_v19 = vpack.c.bf16 %v177_v10, %v173_v7 }
  0x7c   :  { %712 = vmatpush1.bf16.msra.mxu0 %v711_v34  ;;  %v186_v15 = vld [vmem:[#allocation5 + $0x328] sm:$0xff]  ;;  %v184_v17 = vld [vmem:[#allocation5 + $0x318] sm:$0xff]  ;;  %299 = vmatprep.mubr.f32.mxu0 %v84_v16  ;;  %v791_v20 = vpack.c.bf16 %v179_v12, %v175_v11  ;;  %v181_v22 = vld [vmem:[#allocation5 + $0x300] sm:$0xff] }
  0x7d   :  { %776 = vmatpush1.bf16.msra.mxu1 %v775_v35  ;;  %714 = vmatprep.subr.bf16.mxu0 %v713_v36  ;;  %v188_v18 = vld [vmem:[#allocation5 + $0x338] sm:$0xff]  ;;  %v729_v21 = vpack.c.bf16 %v186_v15, %v182_v14  ;;  %v185_v23 = vld [vmem:[#allocation5 + $0x320] sm:$0xff]  ;;  %v183_v24 = vld [vmem:[#allocation5 + $0x310] sm:$0xff] }
  0x7e   :  { %778 = vmatprep.subr.bf16.mxu1 %v777_v40  ;;  %370 = vmatprep.mubr.f32.mxu1 %v84_v16  ;;  %v793_v25 = vpack.c.bf16 %v188_v18, %v184_v17  ;;  %v187_v26 = vld [vmem:[#allocation5 + $0x330] sm:$0xff]  ;;  %v190_v27 = vld [vmem:[#allocation5 + $0x348] sm:$0xff]  ;;  %v192_v29 = vld [vmem:[#allocation5 + $0x358] sm:$0xff]  ;;  %v731_v31 = vpack.c.bf16 %v185_v23, %v181_v22 }
  0x7f   :  { %v194_v28 = vld [vmem:[#allocation5 + $0x368] sm:$0xff]  ;;  %v196_v30 = vld [vmem:[#allocation5 + $0x378] sm:$0xff]  ;;  %v795_v32 = vpack.c.bf16 %v187_v26, %v183_v24  ;;  %v189_v34 = vld [vmem:[#allocation5 + $0x340] sm:$0xff] }
  0x80   :  { %716 = vmatpush1.bf16.msra.mxu0 %v715_v46  ;;  %v733_v33 = vpack.c.bf16 %v194_v28, %v190_v27  ;;  %v193_v35 = vld [vmem:[#allocation5 + $0x360] sm:$0xff]  ;;  %v191_v36 = vld [vmem:[#allocation5 + $0x350] sm:$0xff]  ;;  %v797_v37 = vpack.c.bf16 %v196_v30, %v192_v29  ;;  %v198_v39 = vld [vmem:[#allocation5 + $0x388] sm:$0xff] }
  0x81   :  { %780 = vmatpush1.bf16.msra.mxu1 %v779_v47  ;;  %718 = vmatprep.subr.bf16.mxu0 %v717_v48  ;;  %v195_v38 = vld [vmem:[#allocation5 + $0x370] sm:$0xff]  ;;  %v202_v40 = vld [vmem:[#allocation5 + $0x3a8] sm:$0xff]  ;;  %v200_v41 = vld [vmem:[#allocation5 + $0x398] sm:$0xff]  ;;  %v735_v43 = vpack.c.bf16 %v193_v35, %v189_v34 }
  0x82   :  { %782 = vmatprep.subr.bf16.mxu1 %v781_v52  ;;  %v204_v42 = vld [vmem:[#allocation5 + $0x3b8] sm:$0xff]  ;;  %v799_v44 = vpack.c.bf16 %v195_v38, %v191_v36  ;;  %v737_v45 = vpack.c.bf16 %v202_v40, %v198_v39  ;;  %v197_v46 = vld [vmem:[#allocation5 + $0x380] sm:$0xff]  ;;  %v199_v48 = vld [vmem:[#allocation5 + $0x390] sm:$0xff] }
  0x83   :  { %v201_v47 = vld [vmem:[#allocation5 + $0x3a0] sm:$0xff]  ;;  %v801_v49 = vpack.c.bf16 %v204_v42, %v200_v41  ;;  %v203_v50 = vld [vmem:[#allocation5 + $0x3b0] sm:$0xff]  ;;  %v206_v51 = vld [vmem:[#allocation5 + $0x3c8] sm:$0xff] }
  0x84   :  { %720 = vmatpush1.bf16.msra.mxu0 %v719_v58  ;;  %v210_v52 = vld [vmem:[#allocation5 + $0x3e8] sm:$0xff]  ;;  %v208_v53 = vld [vmem:[#allocation5 + $0x3d8] sm:$0xff]  ;;  %v739_v55 = vpack.c.bf16 %v201_v47, %v197_v46  ;;  %v803_v56 = vpack.c.bf16 %v203_v50, %v199_v48  ;;  %v205_v58 = vld [vmem:[#allocation5 + $0x3c0] sm:$0xff] }
  0x85   :  { %784 = vmatpush1.bf16.msra.mxu1 %v783_v59  ;;  %722 = vmatprep.subr.bf16.mxu0 %v721_v60  ;;  %v212_v54 = vld [vmem:[#allocation5 + $0x3f8] sm:$0xff]  ;;  %v741_v57 = vpack.c.bf16 %v210_v52, %v206_v51  ;;  %v209_v59 = vld [vmem:[#allocation5 + $0x3e0] sm:$0xff]  ;;  %v207_v60 = vld [vmem:[#allocation5 + $0x3d0] sm:$0xff] }
  0x86   :  { %786 = vmatprep.subr.bf16.mxu1 %v785_v0  ;;  %v805_v61 = vpack.c.bf16 %v212_v54, %v208_v53  ;;  %v211_v62 = vld [vmem:[#allocation5 + $0x3f0] sm:$0xff]  ;;  %v397_v63 = vld [vmem:[#allocation8 + $0x80] sm:$0xff]  ;;  %v743_v3 = vpack.c.bf16 %v209_v59, %v205_v58  ;;  %v400_v12 = vld [vmem:[#allocation8 + $0x98] sm:$0xff] }
  0x87   :  { %v398_v0 = vld [vmem:[#allocation8 + $0x88] sm:$0xff]  ;;  %v429_v1 = vld [vmem:[#allocation8 + $0x180] sm:$0xff]  ;;  %v807_v4 = vpack.c.bf16 %v211_v62, %v207_v60  ;;  %v399_v11 = vld [vmem:[#allocation8 + $0x90] sm:$0xff] }
  0x88   :  { %724 = vmatpush1.bf16.msra.mxu0 %v723_v6  ;;  %v430_v2 = vld [vmem:[#allocation8 + $0x188] sm:$0xff]  ;;  %v809_v5 = vpack.c.bf16 %v398_v0, %v397_v63  ;;  %v381_v6 = vld [vmem:[#allocation8] sm:$0xff]  ;;  %v432_v14 = vld [vmem:[#allocation8 + $0x198] sm:$0xff]  ;;  %v813_v18 = vpack.c.bf16 %v400_v12, %v399_v11 }
  0x89   :  { %788 = vmatpush1.bf16.msra.mxu1 %v787_v8  ;;  %726 = vmatprep.subr.bf16.mxu0 %v725_v9  ;;  %v382_v7 = vld [vmem:[#allocation8 + $0x8] sm:$0xff]  ;;  %v413_v8 = vld [vmem:[#allocation8 + $0x100] sm:$0xff]  ;;  %v841_v9 = vpack.c.bf16 %v430_v2, %v429_v1  ;;  %v416_v23 = vld [vmem:[#allocation8 + $0x118] sm:$0xff] }
  0x8a   :  { %790 = vmatprep.subr.bf16.mxu1 %v789_v13  ;;  %v414_v10 = vld [vmem:[#allocation8 + $0x108] sm:$0xff]  ;;  %v431_v13 = vld [vmem:[#allocation8 + $0x190] sm:$0xff]  ;;  %v811_v16 = vpack.c.bf16 %v382_v7, %v381_v6  ;;  %v401_v24 = vld [vmem:[#allocation8 + $0xa0] sm:$0xff] }
  0x8b   :  { %v83_v15 = vld [vmem:[#allocation2] sm:$0xff]  ;;  %v843_v17 = vpack.c.bf16 %v414_v10, %v413_v8  ;;  %v845_v22 = vpack.c.bf16 %v432_v14, %v431_v13  ;;  %v433_v26 = vld [vmem:[#allocation8 + $0x1a0] sm:$0xff]  ;;  %v436_v39 = vld [vmem:[#allocation8 + $0x1b8] sm:$0xff] }
  0x8c   :  { %728 = vmatpush1.bf16.msra.mxu0 %v727_v19  ;;  %v383_v19 = vld [vmem:[#allocation8 + $0x10] sm:$0xff]  ;;  %v434_v27 = vld [vmem:[#allocation8 + $0x1a8] sm:$0xff]  ;;  %v420_v47 = vld [vmem:[#allocation8 + $0x138] sm:$0xff] }
  0x8d   :  { %792 = vmatpush1.bf16.msra.mxu1 %v791_v20  ;;  %730 = vmatprep.subr.bf16.mxu0 %v729_v21  ;;  %v384_v20 = vld [vmem:[#allocation8 + $0x18] sm:$0xff]  ;;  %v415_v21 = vld [vmem:[#allocation8 + $0x110] sm:$0xff]  ;;  %v849_v34 = vpack.c.bf16 %v434_v27, %v433_v26  ;;  %v418_v35 = vld [vmem:[#allocation8 + $0x128] sm:$0xff] }
  0x8e   :  { %794 = vmatprep.subr.bf16.mxu1 %v793_v25  ;;  %v402_v25 = vld [vmem:[#allocation8 + $0xa8] sm:$0xff]  ;;  %v815_v28 = vpack.c.bf16 %v384_v20, %v383_v19  ;;  %v847_v29 = vpack.c.bf16 %v416_v23, %v415_v21  ;;  %v403_v36 = vld [vmem:[#allocation8 + $0xb0] sm:$0xff]  ;;  %v405_v48 = vld [vmem:[#allocation8 + $0xc0] sm:$0xff] }
  0x8f   :  { %v817_v30 = vpack.c.bf16 %v402_v25, %v401_v24  ;;  %v435_v38 = vld [vmem:[#allocation8 + $0x1b0] sm:$0xff]  ;;  %v437_v50 = vld [vmem:[#allocation8 + $0x1c0] sm:$0xff]  ;;  %v438_v51 = vld [vmem:[#allocation8 + $0x1c8] sm:$0xff] }
  0x90   :  { %732 = vmatpush1.bf16.msra.mxu0 %v731_v31  ;;  %v385_v31 = vld [vmem:[#allocation8 + $0x20] sm:$0xff]  ;;  %v853_v46 = vpack.c.bf16 %v436_v39, %v435_v38  ;;  %v857_v58 = vpack.c.bf16 %v438_v51, %v437_v50  ;;  %v422_v59 = vld [vmem:[#allocation8 + $0x148] sm:$0xff]  ;;  %v407_v60 = vld [vmem:[#allocation8 + $0xd0] sm:$0xff] }
  0x91   :  { %796 = vmatpush1.bf16.msra.mxu1 %v795_v32  ;;  %734 = vmatprep.subr.bf16.mxu0 %v733_v33  ;;  %v386_v32 = vld [vmem:[#allocation8 + $0x28] sm:$0xff]  ;;  %v417_v33 = vld [vmem:[#allocation8 + $0x120] sm:$0xff]  ;;  %v439_v62 = vld [vmem:[#allocation8 + $0x1d0] sm:$0xff] }
  0x92   :  { %798 = vmatprep.subr.bf16.mxu1 %v797_v37  ;;  %v404_v37 = vld [vmem:[#allocation8 + $0xb8] sm:$0xff]  ;;  %v819_v40 = vpack.c.bf16 %v386_v32, %v385_v31  ;;  %v851_v41 = vpack.c.bf16 %v418_v35, %v417_v33  ;;  %v409_v8 = vld [vmem:[#allocation8 + $0xe0] sm:$0xff]  ;;  %v442_v11 = vld [vmem:[#allocation8 + $0x1e8] sm:$0xff] }
  0x93   :  { %v821_v42 = vpack.c.bf16 %v404_v37, %v403_v36  ;;  %v440_v63 = vld [vmem:[#allocation8 + $0x1d8] sm:$0xff]  ;;  %v441_v10 = vld [vmem:[#allocation8 + $0x1e0] sm:$0xff]  ;;  %v426_v20 = vld [vmem:[#allocation8 + $0x168] sm:$0xff] }
  0x94   :  { %736 = vmatpush1.bf16.msra.mxu0 %v735_v43  ;;  %v387_v43 = vld [vmem:[#allocation8 + $0x30] sm:$0xff]  ;;  %v861_v6 = vpack.c.bf16 %v440_v63, %v439_v62  ;;  %v424_v7 = vld [vmem:[#allocation8 + $0x158] sm:$0xff] }
  0x95   :  { %800 = vmatpush1.bf16.msra.mxu1 %v799_v44  ;;  %738 = vmatprep.subr.bf16.mxu0 %v737_v45  ;;  %v388_v44 = vld [vmem:[#allocation8 + $0x38] sm:$0xff]  ;;  %v419_v45 = vld [vmem:[#allocation8 + $0x130] sm:$0xff] }
  0x96   :  { %802 = vmatprep.subr.bf16.mxu1 %v801_v49  ;;  %v406_v49 = vld [vmem:[#allocation8 + $0xc8] sm:$0xff]  ;;  %v823_v52 = vpack.c.bf16 %v388_v44, %v387_v43  ;;  %v855_v53 = vpack.c.bf16 %v420_v47, %v419_v45  ;;  %v412_v23 = vld [vmem:[#allocation8 + $0xf8] sm:$0xff]  ;;  %v443_v24 = vld [vmem:[#allocation8 + $0x1f0] sm:$0xff] }
  0x97   :  { %v825_v54 = vpack.c.bf16 %v406_v49, %v405_v48  ;;  %v444_v26 = vld [vmem:[#allocation8 + $0x1f8] sm:$0xff]  ;;  %v395_v27 = vld [vmem:[#allocation8 + $0x70] sm:$0xff] }
  0x98   :  { %740 = vmatpush1.bf16.msra.mxu0 %v739_v55  ;;  %v389_v55 = vld [vmem:[#allocation8 + $0x40] sm:$0xff]  ;;  %v427_v31 = vld [vmem:[#allocation8 + $0x170] sm:$0xff]  ;;  %v428_v32 = vld [vmem:[#allocation8 + $0x178] sm:$0xff] }
  0x99   :  { %804 = vmatpush1.bf16.msra.mxu1 %v803_v56  ;;  %742 = vmatprep.subr.bf16.mxu0 %v741_v57  ;;  %v390_v56 = vld [vmem:[#allocation8 + $0x48] sm:$0xff]  ;;  %v421_v57 = vld [vmem:[#allocation8 + $0x140] sm:$0xff]  ;;  %v871_v33 = vpack.c.bf16 %v428_v32, %v427_v31  ;;  %v213_v37 = vld [vmem:[#allocation7] sm:$0xf] }
  0x9a   :  { %806 = vmatprep.subr.bf16.mxu1 %v805_v61  ;;  %v408_v61 = vld [vmem:[#allocation8 + $0xd8] sm:$0xff]  ;;  %v827_v0 = vpack.c.bf16 %v390_v56, %v389_v55  ;;  %v859_v1 = vpack.c.bf16 %v422_v59, %v421_v57  ;;  %v610_v59 = vld [vmem:[#allocation10] ss:$0 sm:$0xff] }
  0x9b   :  { %v829_v2 = vpack.c.bf16 %v408_v61, %v407_v60 }
  0x9c   :  { %744 = vmatpush1.bf16.msra.mxu0 %v743_v3  ;;  %v391_v3 = vld [vmem:[#allocation8 + $0x50] sm:$0xff] }
  0x9d   :  { %808 = vmatpush1.bf16.msra.mxu1 %v807_v4  ;;  %810 = vmatprep.subr.bf16.mxu0 %v809_v5  ;;  %v392_v4 = vld [vmem:[#allocation8 + $0x58] sm:$0xff]  ;;  %v423_v5 = vld [vmem:[#allocation8 + $0x150] sm:$0xff] }
  0x9e   :  { %842 = vmatprep.subr.bf16.mxu1 %v841_v9  ;;  %v410_v9 = vld [vmem:[#allocation8 + $0xe8] sm:$0xff]  ;;  %v831_v12 = vpack.c.bf16 %v392_v4, %v391_v3  ;;  %v863_v13 = vpack.c.bf16 %v424_v7, %v423_v5 }
  0x9f   :  { %300 = vmatmul.mubr.f32.vlgmr.msra.gmra.mrb[0].mxu0 %v83_v15  ;;  %v833_v14 = vpack.c.bf16 %v410_v9, %v409_v8 }
  0xa0   :  { %371 = vmatmul.mubr.f32.vlgmr.msra.gmra.mrb[0].mxu1 %v83_v15  ;;  %812 = vmatpush3.bf16.msra.mxu0 %v811_v16  ;;  %v865_v15 = vpack.c.bf16 %v442_v11, %v441_v10  ;;  %v393_v16 = vld [vmem:[#allocation8 + $0x60] sm:$0xff] }
  0xa1   :  { %844 = vmatpush3.bf16.msra.mxu1 %v843_v17  ;;  %814 = vmatprep.subr.bf16.mxu0 %v813_v18  ;;  %v394_v17 = vld [vmem:[#allocation8 + $0x68] sm:$0xff]  ;;  %v425_v18 = vld [vmem:[#allocation8 + $0x160] sm:$0xff] }
  0xa2   :  { %846 = vmatprep.subr.bf16.mxu1 %v845_v22  ;;  %v835_v19 = vpack.c.bf16 %v394_v17, %v393_v16  ;;  %v867_v21 = vpack.c.bf16 %v426_v20, %v425_v18  ;;  %v411_v22 = vld [vmem:[#allocation8 + $0xf0] sm:$0xff] }
  0xa3   :  { %v837_v25 = vpack.c.bf16 %v412_v23, %v411_v22 }
  0xa4   :  { %816 = vmatpush3.bf16.msra.mxu0 %v815_v28  ;;  %v396_v28 = vld [vmem:[#allocation8 + $0x78] sm:$0xff] }
  0xa5   :  { %848 = vmatpush3.bf16.msra.mxu1 %v847_v29  ;;  %818 = vmatprep.subr.bf16.mxu0 %v817_v30  ;;  %v869_v29 = vpack.c.bf16 %v444_v26, %v443_v24  ;;  %v839_v30 = vpack.c.bf16 %v396_v28, %v395_v27 }
  0xa6   :  { %850 = vmatprep.subr.bf16.mxu1 %v849_v34  ;;  %v215_v34 = vlaneseq }
  0xa8   :  { %820 = vmatpush3.bf16.msra.mxu0 %v819_v40  ;;  %v216_v35 = vshrl.u32 %v215_v34, 7 }
  0xa9   :  { %852 = vmatpush3.bf16.msra.mxu1 %v851_v41  ;;  %822 = vmatprep.subr.bf16.mxu0 %v821_v42 }
  0xaa   :  { %854 = vmatprep.subr.bf16.mxu1 %v853_v46  ;;  %v217_v36 = vsub.s32 0, %v216_v35  ;;  %v225_v38 = vsub.s32 2, %v216_v35  ;;  %v221_v39 = vsub.s32 1, %v216_v35  ;;  %v229_v40 = vsub.s32 3, %v216_v35 }
  0xac   :  { %824 = vmatpush3.bf16.msra.mxu0 %v823_v52  ;;  %v218_v41 = vrot.slane %v213_v37, %v217_v36  ;;  %v226_v42 = vrot.slane %v213_v37, %v225_v38  ;;  %v222_v43 = vrot.slane %v213_v37, %v221_v39  ;;  %v230_v44 = vrot.slane %v213_v37, %v229_v40 }
  0xad   :  { %856 = vmatpush3.bf16.msra.mxu1 %v855_v53  ;;  %826 = vmatprep.subr.bf16.mxu0 %v825_v54 }
  0xae   :  { %858 = vmatprep.subr.bf16.mxu1 %v857_v58 }
  0xb0   :  { %828 = vmatpush3.bf16.msra.mxu0 %v827_v0 }
  0xb1   :  { %860 = vmatpush3.bf16.msra.mxu1 %v859_v1  ;;  %830 = vmatprep.subr.bf16.mxu0 %v829_v2 }
  0xb2   :  { %862 = vmatprep.subr.bf16.mxu1 %v861_v6 }
  0xb4   :  { %832 = vmatpush3.bf16.msra.mxu0 %v831_v12 }
  0xb5   :  { %864 = vmatpush3.bf16.msra.mxu1 %v863_v13  ;;  %834 = vmatprep.subr.bf16.mxu0 %v833_v14 }
  0xb6   :  { %866 = vmatprep.subr.bf16.mxu1 %v865_v15 }
  0xb8   :  { %836 = vmatpush3.bf16.msra.mxu0 %v835_v19 }
  0xb9   :  { %868 = vmatpush3.bf16.msra.mxu1 %v867_v21  ;;  %838 = vmatprep.subr.bf16.mxu0 %v837_v25 }
  0xba   :  { %870 = vmatprep.subr.bf16.mxu1 %v869_v29 }
  0xbc   :  { %840 = vmatpush3.bf16.msra.mxu0 %v839_v30 }
  0xbd   :  { %872 = vmatpush3.bf16.msra.mxu1 %v871_v33 }
 0x172   :  { %v301_v45 = vpop.f32.mrb[0].mxu0 }
 0x173   :  { %v302_v46 = vadd.f32 %v301_v45, %v218_v41  ;;  %v372_v47 = vpop.f32.mrb[0].mxu1  ;;  %v303_v48 = vpop.f32.mrb[1].mxu0 }
 0x174   :  { %v373_v49 = vadd.f32 %v372_v47, %v226_v42  ;;  %v304_v50 = vadd.f32 %v303_v48, %v222_v43  ;;  %v374_v51 = vpop.f32.mrb[1].mxu1 }
 0x175   :  { %v375_v52 = vadd.f32 %v374_v51, %v230_v44  ;;  %v377_v55 = vmax.f32 %v302_v46, 0.0 }
 0x176   :  { %v379_v53 = vmax.f32 %v373_v49, 0.0  ;;  %v378_v54 = vmax.f32 %v304_v50, 0.0 }
 0x177   :  { %v380_v56 = vmax.f32 %v375_v52, 0.0 }
 0x178   :  { %516 = vmatprep.mubr.f32.mxu0 %v378_v54 }
 0x179   :  { %586 = vmatprep.mubr.f32.mxu1 %v380_v56  ;;  %517 = vmatmul.mubr.f32.vlgmr.msra.gmra.mrb[2].mxu0 %v377_v55 }
 0x17a   :  { %587 = vmatmul.mubr.f32.vlgmr.msra.gmra.mrb[2].mxu1 %v379_v53 }
 0x24c   :  { %v643_v57 = vpop.f32.mrb[2].mxu0 }
 0x24d   :  { %v678_v58 = vpop.f32.mrb[2].mxu1  ;;  %v644_v60 = vpop.f32.mrb[3].mxu0 }
 0x24e   :  { %v645_v61 = vadd.f32 %v644_v60, %v643_v57  ;;  %v679_v62 = vpop.f32.mrb[3].mxu1 }
 0x24f   :  { %v680_v63 = vadd.f32 %v679_v62, %v678_v58 }
 0x250   :  { %v519_v0 = vadd.f32 %v645_v61, %v610_v59 }
 0x252   :  { %v589_v1 = vadd.f32 %v680_v63, %v519_v0 }
 0x254   :  { %592 = vst [vmem:[#allocation11] sm:$0xff] %v589_v1 }
 0x255   :  { %1004 = shalt.err (!%p1001_p2)
}
 0x256   :  { %s1005_s6 = scalar_lea.hbm %s1140_s5, 128 }
 0x257   :  { %p1006_p3 = scmp.ne.s32.totalorder %s1140_s5, %s1005_s6  ;;  %p1009_p4 = scmp.lt.u32.totalorder %s1005_s6, %s1140_s5 }
 0x259   :  { %p1011_p5 = pnand %p1009_p4, %p1006_p3 }
 0x25b   :  { %1014 = shalt.err (!%p1011_p5)
}
 0x25c   :  { %602 = dma.vmem_to_hbm [thread:$0]  %s600_s28, 128, %s1140_s5, [#allocation4]  }
 0x25d   :  { %1021 = dma.done.wait [#allocation4], 128  }
 0x25e   :  { %1022 = vsyncadd [#allocation4], 4294967168 }
 0x25f   :  { %606 = vsyncpa [#allocation3], 1 }
 0x260   :  { %607 = vsyncpa [#allocation6], 1 }
 0x261   :  { %608 = vsyncpa [#allocation9], 1 }
 0x262   :  { %609 = vsyncpa [#allocation4], 1 }

</bundles_post_ra>
